<compile_context>
chip_gen: v7x
topology: tpu7x:2x2x1
jax: 0.10.0
libtpu: 0.0.40
codegen_flags: <defaults>
</compile_context>

<pallas_src>
import math

import jax
import jax.numpy as jnp
from jax.experimental import pallas as pl
from jax.experimental.pallas import tpu as pltpu


H = 50       # hidden width
D_IN = 2     # (t, state) collocation coordinates
D_OUT = 1


def _round_up(n, m):
    return ((n + m - 1) // m) * m


def _pinn_kernel(xT_ref, w1_ref, b1_ref, w2_ref, b2_ref, w3_ref, b3_ref, oT_ref):
    xT = xT_ref[...]                                   # (2, TB)  batch on lanes
    w1 = w1_ref[...]                                   # (H, 2)   PyTorch (out, in) layout

    # fc1: K=2 contraction on the VPU (a 2-row MXU pass would waste the array).
    h1 = jnp.tanh(
        w1[:, 0:1] * xT[0:1, :] + w1[:, 1:2] * xT[1:2, :] + b1_ref[...]
    )                                                  # (H, TB)

    # fc2: MXU tile, N = TB lanes.
    h2 = jnp.tanh(
        jnp.dot(w2_ref[...], h1, preferred_element_type=jnp.float32) + b2_ref[...]
    )                                                  # (H, TB)

    # fc3: 1x50 @ 50xTB (MXU has slack here; output stays lane-dense).
    out = jnp.dot(w3_ref[...], h2, preferred_element_type=jnp.float32) + b3_ref[...]
    oT_ref[...] = out.astype(oT_ref.dtype)             # (1, TB) lane-dense store


def pinn_forward(x, params, *, tb=4096):
    """x: (B, 2) float32. Returns (B, 1) float32, matching PyTorch PINN.forward."""
    w1, b1, w2, b2, w3, b3 = params                    # PyTorch layout: W (out, in), b (out,)
    B = x.shape[0]

    # Lane-aligned batch tile; shrink for small batches (per-step footprint at
    # tb=4096 is ~1.7 MiB, far below the scoped VMEM default on v5e/v6e/v7x).
    tb = min(tb, _round_up(max(B, 1), 128))
    B_pad = _round_up(B, tb)

    xT = jnp.transpose(x.astype(jnp.float32))          # (2, B): batch on lanes
    if B_pad != B:
        xT = jnp.pad(xT, ((0, 0), (0, B_pad - B)))

    grid = (B_pad // tb,)

    weight_bytes = 4 * (H * D_IN + H + H * H + H + D_OUT * H + D_OUT)
    cost = pl.CostEstimate(
        flops=2 * B_pad * (D_IN * H + H * H + H * D_OUT),
        transcendentals=2 * H * B_pad,
        bytes_accessed=4 * B_pad * (D_IN + D_OUT) + weight_bytes,
    )

    const = lambda shape: pl.BlockSpec(shape, lambda i: (0, 0))

    outT = pl.pallas_call(
        _pinn_kernel,
        out_shape=jax.ShapeDtypeStruct((D_OUT, B_pad), jnp.float32),
        grid=grid,
        in_specs=[
            pl.BlockSpec((D_IN, tb), lambda i: (0, i)),    # x tile, lane-dense
            const((H, D_IN)), const((H, 1)),               # fc1 (VMEM-resident)
            const((H, H)), const((H, 1)),                  # fc2
            const((D_OUT, H)), const((D_OUT, 1)),          # fc3
        ],
        out_specs=pl.BlockSpec((D_OUT, tb), lambda i: (0, i)),
        compiler_params=pltpu.CompilerParams(
            dimension_semantics=("parallel",),             # v7x: shard batch over both TCs
        ),
        cost_estimate=cost,
    )(xT, w1, b1.reshape(H, 1), w2, b2.reshape(H, 1), w3, b3.reshape(D_OUT, 1))

    return jnp.transpose(outT[:, :B])                      # (B, 1); (1,B)->(B,1) is a free reshape


def init_params(key):
    """PyTorch nn.Linear default init: uniform(-1/sqrt(fan_in), +1/sqrt(fan_in)),
    weights stored in PyTorch's native (out_features, in_features) layout."""
    def linear(key, fan_in, fan_out):
        kw, kb = jax.random.split(key)
        bound = 1.0 / math.sqrt(fan_in)
        w = jax.random.uniform(kw, (fan_out, fan_in), jnp.float32, -bound, bound)
        b = jax.random.uniform(kb, (fan_out,), jnp.float32, -bound, bound)
        return w, b

    k1, k2, k3 = jax.random.split(key, 3)
    w1, b1 = linear(k1, D_IN, H)
    w2, b2 = linear(k2, H, H)
    w3, b3 = linear(k3, H, D_OUT)
    return (w1, b1, w2, b2, w3, b3)


def pinn_reference(x, params):
    """Pure-JAX reference (PyTorch semantics: y = x @ W.T + b)."""
    w1, b1, w2, b2, w3, b3 = params
    h1 = jnp.tanh(x @ w1.T + b1)
    h2 = jnp.tanh(h1 @ w2.T + b2)
    return h2 @ w3.T + b3


if __name__ == "__main__":
    key = jax.random.PRNGKey(0)
    k_params, k_x1, k_x2 = jax.random.split(key, 3)

    params = init_params(k_params)

    # Small batch of (t, state) collocation points.
    x = jax.random.normal(k_x1, (8, 2), dtype=jnp.float32)
    out = jax.block_until_ready(pinn_forward(x, params))
    ref = pinn_reference(x, params)
    assert out.shape == (8, 1), out.shape
    assert jnp.allclose(out, ref, atol=1e-5, rtol=1e-5), "mismatch vs reference (small batch)"

    # Larger ragged batch: exercises padding + a multi-step batch grid (3 tiles of 128).
    x2 = jax.random.normal(k_x2, (300, 2), dtype=jnp.float32)
    out2 = jax.block_until_ready(pinn_forward(x2, params, tb=128))
    ref2 = pinn_reference(x2, params)
    assert out2.shape == (300, 1), out2.shape
    assert jnp.allclose(out2, ref2, atol=1e-5, rtol=1e-5), "mismatch vs reference (tiled batch)"

    print("KERNEL_OK")
</pallas_src>

<mosaic_0001>
module attributes {stable_mosaic.version = 11 : i64} {
  func.func @_pinn_kernel(%arg0: i32, %arg1: memref<2x128xf32, #tpu.memory_space<vmem>>, %arg2: memref<50x2xf32, #tpu.memory_space<vmem>>, %arg3: memref<50x1xf32, #tpu.memory_space<vmem>>, %arg4: memref<50x50xf32, #tpu.memory_space<vmem>>, %arg5: memref<50x1xf32, #tpu.memory_space<vmem>>, %arg6: memref<1x50xf32, #tpu.memory_space<vmem>>, %arg7: memref<1x1xf32, #tpu.memory_space<vmem>>, %arg8: memref<1x128xf32, #tpu.memory_space<vmem>>) attributes {dimension_semantics = [#tpu.dimension_semantics<parallel>], iteration_bounds = array<i64: 1>, scalar_prefetch = 0 : i64, scratch_operands = 0 : i64, tpu.core_type = #tpu.core_type<tc>, window_params = [{transform_indices = @transform_0, window_bounds = array<i64: 2, 128>}, {pipeline_mode = #tpu.pipeline_mode<synchronous>, transform_indices = @transform_1, window_bounds = array<i64: 50, 2>}, {pipeline_mode = #tpu.pipeline_mode<synchronous>, transform_indices = @transform_2, window_bounds = array<i64: 50, 1>}, {pipeline_mode = #tpu.pipeline_mode<synchronous>, transform_indices = @transform_3, window_bounds = array<i64: 50, 50>}, {pipeline_mode = #tpu.pipeline_mode<synchronous>, transform_indices = @transform_4, window_bounds = array<i64: 50, 1>}, {pipeline_mode = #tpu.pipeline_mode<synchronous>, transform_indices = @transform_5, window_bounds = array<i64: 1, 50>}, {pipeline_mode = #tpu.pipeline_mode<synchronous>, transform_indices = @transform_6, window_bounds = array<i64: 1, 1>}, {transform_indices = @transform_7, window_bounds = array<i64: 1, 128>}]} {
    %c0 = arith.constant 0 : index
    %c0_0 = arith.constant 0 : index
    %0 = vector.load %arg1[%c0, %c0_0] : memref<2x128xf32, #tpu.memory_space<vmem>>, vector<2x128xf32>
    %c0_1 = arith.constant 0 : index
    %c0_2 = arith.constant 0 : index
    %1 = vector.load %arg2[%c0_1, %c0_2] : memref<50x2xf32, #tpu.memory_space<vmem>>, vector<50x2xf32>
    %2 = vector.extract_strided_slice %1 {offsets = [0, 0], sizes = [50, 1], strides = [1, 1]} : vector<50x2xf32> to vector<50x1xf32>
    %3 = vector.extract_strided_slice %0 {offsets = [0, 0], sizes = [1, 128], strides = [1, 1]} : vector<2x128xf32> to vector<1x128xf32>
    %4 = vector.broadcast %2 : vector<50x1xf32> to vector<50x128xf32>
    %5 = vector.broadcast %3 : vector<1x128xf32> to vector<50x128xf32>
    %6 = arith.mulf %4, %5 : vector<50x128xf32>
    %7 = vector.extract_strided_slice %1 {offsets = [0, 1], sizes = [50, 1], strides = [1, 1]} : vector<50x2xf32> to vector<50x1xf32>
    %8 = vector.extract_strided_slice %0 {offsets = [1, 0], sizes = [1, 128], strides = [1, 1]} : vector<2x128xf32> to vector<1x128xf32>
    %9 = vector.broadcast %7 : vector<50x1xf32> to vector<50x128xf32>
    %10 = vector.broadcast %8 : vector<1x128xf32> to vector<50x128xf32>
    %11 = arith.mulf %9, %10 : vector<50x128xf32>
    %12 = arith.addf %6, %11 : vector<50x128xf32>
    %c0_3 = arith.constant 0 : index
    %c0_4 = arith.constant 0 : index
    %13 = vector.load %arg3[%c0_3, %c0_4] : memref<50x1xf32, #tpu.memory_space<vmem>>, vector<50x1xf32>
    %14 = vector.broadcast %13 : vector<50x1xf32> to vector<50x128xf32>
    %15 = arith.addf %12, %14 : vector<50x128xf32>
    %16 = math.tanh %15 : vector<50x128xf32>
    %c0_5 = arith.constant 0 : index
    %c0_6 = arith.constant 0 : index
    %17 = vector.load %arg4[%c0_5, %c0_6] : memref<50x50xf32, #tpu.memory_space<vmem>>, vector<50x50xf32>
    %cst = arith.constant dense<0.000000e+00> : vector<50x128xf32>
    %18 = tpu.matmul %17, %16, %cst {dimension_numbers = #tpu.dot_dimension_numbers<[1], [0], [0], [1], [0, 0, 1, 1], [], []>} : vector<50x50xf32>, vector<50x128xf32>, vector<50x128xf32> -> vector<50x128xf32>
    %c0_7 = arith.constant 0 : index
    %c0_8 = arith.constant 0 : index
    %19 = vector.load %arg5[%c0_7, %c0_8] : memref<50x1xf32, #tpu.memory_space<vmem>>, vector<50x1xf32>
    %20 = vector.broadcast %19 : vector<50x1xf32> to vector<50x128xf32>
    %21 = arith.addf %18, %20 : vector<50x128xf32>
    %22 = math.tanh %21 : vector<50x128xf32>
    %c0_9 = arith.constant 0 : index
    %c0_10 = arith.constant 0 : index
    %23 = vector.load %arg6[%c0_9, %c0_10] : memref<1x50xf32, #tpu.memory_space<vmem>>, vector<1x50xf32>
    %cst_11 = arith.constant dense<0.000000e+00> : vector<1x128xf32>
    %24 = tpu.matmul %23, %22, %cst_11 {dimension_numbers = #tpu.dot_dimension_numbers<[1], [0], [0], [1], [0, 0, 1, 1], [], []>} : vector<1x50xf32>, vector<50x128xf32>, vector<1x128xf32> -> vector<1x128xf32>
    %c0_12 = arith.constant 0 : index
    %c0_13 = arith.constant 0 : index
    %25 = vector.load %arg7[%c0_12, %c0_13] : memref<1x1xf32, #tpu.memory_space<vmem>>, vector<1x1xf32>
    %26 = vector.broadcast %25 : vector<1x1xf32> to vector<1x128xf32>
    %27 = arith.addf %24, %26 : vector<1x128xf32>
    %c0_14 = arith.constant 0 : index
    %c0_15 = arith.constant 0 : index
    %28 = vector.load %arg8[%c0_14, %c0_15] : memref<1x128xf32, #tpu.memory_space<vmem>>, vector<1x128xf32>
    tpu.vector_store %arg8[%c0_14, %c0_15], %27 {strides = array<i32>} : memref<1x128xf32, #tpu.memory_space<vmem>>, vector<1x128xf32>,
    return
  }
  func.func @transform_0(%arg0: i32) -> (i32, i32) {
    %c0_i32 = arith.constant 0 : i32
    %c0_i32_0 = arith.constant 0 : i32
    return %c0_i32, %arg0 : i32, i32
  }
  func.func @transform_1(%arg0: i32) -> (i32, i32) {
    %c0_i32 = arith.constant 0 : i32
    %c0_i32_0 = arith.constant 0 : i32
    %c0_i32_1 = arith.constant 0 : i32
    return %c0_i32, %c0_i32_0 : i32, i32
  }
  func.func @transform_2(%arg0: i32) -> (i32, i32) {
    %c0_i32 = arith.constant 0 : i32
    %c0_i32_0 = arith.constant 0 : i32
    %c0_i32_1 = arith.constant 0 : i32
    return %c0_i32, %c0_i32_0 : i32, i32
  }
  func.func @transform_3(%arg0: i32) -> (i32, i32) {
    %c0_i32 = arith.constant 0 : i32
    %c0_i32_0 = arith.constant 0 : i32
    %c0_i32_1 = arith.constant 0 : i32
    return %c0_i32, %c0_i32_0 : i32, i32
  }
  func.func @transform_4(%arg0: i32) -> (i32, i32) {
    %c0_i32 = arith.constant 0 : i32
    %c0_i32_0 = arith.constant 0 : i32
    %c0_i32_1 = arith.constant 0 : i32
    return %c0_i32, %c0_i32_0 : i32, i32
  }
  func.func @transform_5(%arg0: i32) -> (i32, i32) {
    %c0_i32 = arith.constant 0 : i32
    %c0_i32_0 = arith.constant 0 : i32
    %c0_i32_1 = arith.constant 0 : i32
    return %c0_i32, %c0_i32_0 : i32, i32
  }
  func.func @transform_6(%arg0: i32) -> (i32, i32) {
    %c0_i32 = arith.constant 0 : i32
    %c0_i32_0 = arith.constant 0 : i32
    %c0_i32_1 = arith.constant 0 : i32
    return %c0_i32, %c0_i32_0 : i32, i32
  }
  func.func @transform_7(%arg0: i32) -> (i32, i32) {
    %c0_i32 = arith.constant 0 : i32
    %c0_i32_0 = arith.constant 0 : i32
    return %c0_i32, %arg0 : i32, i32
  }
}

</mosaic_0001>

<bundles_post_ra>
// kernel: tpu_custom_call.1
= control target key start
LH: loop header
LB: loop body
LE: loop exit
PB: predicated region body
PF: predicated region fallthrough
CT: control target
= control target key end

     0   :  { %s832_s0 = inlined_call_operand.vmem [shape: f32[2,128], index: 0, kind: input, shape index: {}]   ;;  %s833_s1 = inlined_call_operand.vmem [shape: f32[50,2], index: 1, kind: input, shape index: {}]   ;;  %s834_s2 = inlined_call_operand.vmem [shape: f32[50,1], index: 2, kind: input, shape index: {}]   ;;  %s835_s3 = inlined_call_operand.vmem [shape: f32[50,50], index: 3, kind: input, shape index: {}]   ;;  %s836_s4 = inlined_call_operand.vmem [shape: f32[50,1], index: 4, kind: input, shape index: {}]   ;;  %s837_s5 = inlined_call_operand.vmem [shape: f32[1,50], index: 5, kind: input, shape index: {}]   ;;  %s838_s6 = inlined_call_operand.<no memory space> [shape: f32[1,1], index: 6, kind: input, shape index: {}]   ;;  %s839_s7 = inlined_call_operand.hbm [shape: f32[1,128], index: 7, kind: output, shape index: {}]  }
   0x1   :  { %v12_v0 = vstv %s838_s6 }
   0x2   :  { %13 = vst [vmem:[#allocation2] sm:$0x1] %v12_v0 }
   0x3   :  { %v32_v1 = vld [vmem:[%s833_s1 + $0x10] sm:$0xff]  ;;  %v30_v2 = vld [vmem:[%s833_s1] sm:$0xff]  ;;  %v639_v3 = vmov 1   ;;  %v31_v5 = vld [vmem:[%s833_s1 + $0x8] sm:$0xff] }
   0x4   :  { %579 = vset.pattern.permute.xlu0 %v639_v3  ;;  %577 = vset.pattern.permute.xlu1 %v639_v3  ;;  %v34_v4 = vld [vmem:[%s833_s1 + $0x20] sm:$0xff] }
   0x5   :  { %92 = vperm.xlu0 %579, %v32_v1   ;;  %84 = vperm.xlu1 %577, %v30_v2  }
   0x9   :  { %100 = vperm.xlu0 %579, %v34_v4   ;;  %88 = vperm.xlu1 %577, %v31_v5  }
   0xa   :  { %14 = vsyncpa [#allocation4], 0  ;;  %v33_v6 = vld [vmem:[%s833_s1 + $0x18] sm:$0xff]  ;;  %v640_v7 = vmov 0   ;;  %v129_v8 = vld [vmem:[%s834_s2] sm:$0xff]  ;;  %v641_v14 = vmov 0.0|0.0   ;;  %v72_v27 = vlaneseq }
   0xb   :  { %v130_v9 = vld [vmem:[%s834_s2 + $0x8] sm:$0xff]  ;;  %v132_v10 = vld [vmem:[%s834_s2 + $0x18] sm:$0xff]  ;;  %v36_v12 = vld [vmem:[%s833_s1 + $0x30] sm:$0x3]  ;;  %553 = vmatprep.subr.bf16.mxu0 %v641_v14  ;;  %562 = vmatprep.subr.bf16.mxu1 %v641_v14  ;;  %vm642_vm0 = vmmov 0   ;;  %v643_v22 = vmov 0.0  }
   0xc   :  { %v35_v11 = vld [vmem:[%s833_s1 + $0x28] sm:$0xff]  ;;  %v135_v13 = vld [vmem:[%s834_s2 + $0x30] sm:$0x3]  ;;  %v195_v17 = vld [vmem:[%s836_s4 + $0x18] sm:$0xff]  ;;  %515 = vmatprep.mubr.msk.f32.mxu0 %vm642_vm0, %v643_v22  ;;  %550 = vmatprep.mubr.msk.f32.mxu1 %vm642_vm0, %v643_v22  ;;  %v757_v30 = vshrl.u32 %v72_v27, 7  ;;  %vm256_vm1 = vcmask 1041408  }
   0xd   :  { %582 = vset.pattern.permute.xlu0 %v640_v7  ;;  %578 = vset.pattern.permute.xlu1 %v640_v7  ;;  %v193_v15 = vld [vmem:[%s836_s4 + $0x8] sm:$0xff]  ;;  %v131_v16 = vld [vmem:[%s834_s2 + $0x10] sm:$0xff]  ;;  %v133_v18 = vld [vmem:[%s834_s2 + $0x20] sm:$0xff]  ;;  %vm234_vm2 = vcmask 408576   ;;  %s644_s9 = smov [#allocation3]  }
   0xe   :  { %39 = vperm.xlu0 %582, %v30_v2   ;;  %54 = vperm.xlu1 %578, %v33_v6   ;;  %v197_v19 = vld [vmem:[%s836_s4 + $0x28] sm:$0xff]  ;;  %v368_v21 = vld [vmem:[#allocation2] sm:$0x1]  ;;  %v194_v24 = vld [vmem:[%s836_s4 + $0x10] sm:$0xff]  ;;  %v74_v33 = vsub.s32 0, %v757_v30  ;;  %v113_v34 = vsub.s32 1, %v757_v30 }
   0xf   :  { %v134_v20 = vld [vmem:[%s834_s2 + $0x28] sm:$0xff]  ;;  %v192_v23 = vld [vmem:[%s836_s4] sm:$0xff]  ;;  %v198_v26 = vld [vmem:[%s836_s4 + $0x30] sm:$0x3]  ;;  %s461_s6 = sshll.u32 %s644_s9, 4  ;;  %s462_s6 = int_to_ptr.vmem [resolvable:$true] %s461_s6 }
  0x10   :  { %v196_v25 = vld [vmem:[%s836_s4 + $0x20] sm:$0xff]  ;;  %s615_s10 = scalar_lea.vmem %s462_s6, 16  ;;  %s619_s11 = scalar_lea.vmem %s462_s6, 32 }
  0x11   :  { %v29_v35 = vld [vmem:[%s832_s0] sm:$0x3]  ;;  %p616_p0 = scmp.ne.s32.totalorder %s462_s6, %s615_s10  ;;  %p620_p1 = scmp.lt.s32.totalorder %s462_s6, %s462_s6 }
  0x12   :  { %44 = vperm.xlu0 %582, %v31_v5   ;;  %580 = vset.pattern.permute.xlu1 %v639_v3  ;;  %v75_v38 = vrot.slane %v29_v35, %v74_v33  ;;  %v114_v39 = vrot.slane %v29_v35, %v113_v34  ;;  %v186_v34 = vld [vmem:[%s835_s3 + $0x8] sm:$0xff]  ;;  %v187_v35 = vld [vmem:[%s835_s3 + $0x10] sm:$0xff]  ;;  %p621_p2 = scmp.lt.s32.totalorder %s619_s11, %s615_s10 }
  0x13   :  { %96 = vperm.xlu1 %580, %v33_v6  }
  0x14   :  { %p622_p3 = por %p621_p2, %p620_p1 }
  0x16   :  { %49 = vperm.xlu0 %582, %v32_v1   ;;  %p623_p4 = pnand %p622_p3, %p616_p0 }
  0x17   :  { %581 = vset.pattern.permute.xlu1 %v640_v7 }
  0x18   :  { %138 = vperm.xlu1 %581, %v129_v8  }
  0x1a   :  { %143 = vperm.xlu0 %582, %v130_v9  }
  0x1c   :  { %59 = vperm.xlu1 %581, %v34_v4  }
  0x1e   :  { %153 = vperm.xlu0 %582, %v132_v10  }
  0x20   :  { %64 = vperm.xlu1 %581, %v35_v11  }
  0x22   :  { %69 = vperm.xlu0 %582, %v36_v12  }
  0x24   :  { %583 = vset.pattern.permute.xlu1 %v639_v3 }
  0x25   :  { %104 = vperm.xlu1 %583, %v35_v11  }
  0x26   :  { %168 = vperm.xlu0 %582, %v135_v13  }
  0x29   :  { %584 = vset.pattern.permute.xlu1 %v640_v7 }
  0x2a   :  { %206 = vperm.xlu0 %582, %v193_v15   ;;  %148 = vperm.xlu1 %584, %v131_v16  }
  0x2e   :  { %216 = vperm.xlu0 %582, %v195_v17   ;;  %158 = vperm.xlu1 %584, %v133_v18  }
  0x32   :  { %226 = vperm.xlu0 %582, %v197_v19   ;;  %163 = vperm.xlu1 %584, %v134_v20  }
  0x36   :  { %371 = vperm.xlu0 %582, %v368_v21   ;;  %585 = vset.pattern.permute.xlu1 %v639_v3 }
  0x37   :  { %108 = vperm.xlu1 %585, %v36_v12  }
  0x3b   :  { %586 = vset.pattern.permute.xlu1 %v640_v7 }
  0x3c   :  { %201 = vperm.xlu1 %586, %v192_v23  }
  0x40   :  { %211 = vperm.xlu1 %586, %v194_v24  }
  0x44   :  { %221 = vperm.xlu1 %586, %v196_v25  }
  0x48   :  { %231 = vperm.xlu1 %586, %v198_v26  }
  0x84   :  { %v85_v28 = vpop.permute.xlu1 %84  ;;  %v93_v29 = vpop.permute.xlu0 %92 }
  0x85   :  { %v115_v43 = vmul.f32 %v114_v39, %v85_v28  ;;  %v117_v57 = vmul.f32 %v114_v39, %v93_v29 }
  0x88   :  { %v89_v31 = vpop.permute.xlu1 %88  ;;  %v101_v32 = vpop.permute.xlu0 %100 }
  0x89   :  { %v116_v46 = vmul.f32 %v114_v39, %v89_v31  ;;  %v119_v6 = vmul.f32 %v114_v39, %v101_v32  ;;  %v185_v31 = vld [vmem:[%s835_s3] sm:$0xff] }
  0x8d   :  { %v40_v36 = vpop.permute.xlu0 %39  ;;  %v55_v37 = vpop.permute.xlu1 %54 }
  0x8e   :  { %v76_v41 = vmul.f32 %v75_v38, %v40_v36  ;;  %v79_v56 = vmul.f32 %v75_v38, %v55_v37  ;;  %v188_v36 = vld [vmem:[%s835_s3 + $0x18] sm:$0xff]  ;;  %v189_v37 = vld [vmem:[%s835_s3 + $0x20] sm:$0xff] }
  0x90   :  { %v122_v47 = vadd.f32 %v115_v43, %v76_v41 }
  0x91   :  { %v45_v40 = vpop.permute.xlu0 %44 }
  0x92   :  { %v97_v42 = vpop.permute.xlu1 %96  ;;  %v77_v44 = vmul.f32 %v75_v38, %v45_v40 }
  0x93   :  { %v118_v55 = vmul.f32 %v114_v39, %v97_v42 }
  0x94   :  { %v123_v50 = vadd.f32 %v116_v46, %v77_v44 }
  0x95   :  { %v50_v45 = vpop.permute.xlu0 %49  ;;  %v125_v62 = vadd.f32 %v118_v55, %v79_v56 }
  0x96   :  { %v78_v58 = vmul.f32 %v75_v38, %v50_v45 }
  0x97   :  { %v139_v48 = vpop.permute.xlu1 %138 }
  0x98   :  { %v171_v49 = vadd.f32 %v139_v48, %v122_v47  ;;  %v124_v2 = vadd.f32 %v117_v57, %v78_v58 }
  0x99   :  { %v144_v51 = vpop.permute.xlu0 %143 }
  0x9a   :  { %v172_v52 = vadd.f32 %v144_v51, %v123_v50  ;;  %587 = vtanh.f32 %v171_v49 }
  0x9b   :  { %v60_v53 = vpop.permute.xlu1 %59 }
  0x9c   :  { %589 = vtanh.f32 %v172_v52  ;;  %v80_v3 = vmul.f32 %v75_v38, %v60_v53 }
  0x9d   :  { %v154_v59 = vpop.permute.xlu0 %153 }
  0x9e   :  { %v174_v0 = vadd.f32 %v154_v59, %v125_v62  ;;  %v126_v9 = vadd.f32 %v119_v6, %v80_v3 }
  0x9f   :  { %v65_v54 = vpop.permute.xlu1 %64 }
  0xa0   :  { %591 = vtanh.f32 %v174_v0  ;;  %v81_v10 = vmul.f32 %v75_v38, %v65_v54 }
  0xa1   :  { %v70_v16 = vpop.permute.xlu0 %69 }
  0xa2   :  { %v82_v20 = vmul.f32 %v75_v38, %v70_v16  ;;  %v190_v38 = vld [vmem:[%s835_s3 + $0x28] sm:$0xff] }
  0xa4   :  { %v105_v60 = vpop.permute.xlu1 %104  ;;  %v588_v61 = vpop.eup %587 }
  0xa5   :  { %v120_v7 = vmul.f32 %v114_v39, %v105_v60  ;;  %v169_v25 = vpop.permute.xlu0 %168 }
  0xa6   :  { %v590_v63 = vpop.eup %589 }
  0xa7   :  { %v554_v1 = vpack.c.bf16 %v590_v63, %v588_v61  ;;  %v127_v12 = vadd.f32 %v120_v7, %v81_v10 }
  0xa9   :  { %v149_v4 = vpop.permute.xlu1 %148  ;;  %555 = vmatpush3.bf16.msra.mxu0 %v554_v1  ;;  %v207_v44 = vpop.permute.xlu0 %206 }
  0xaa   :  { %v173_v5 = vadd.f32 %v149_v4, %v124_v2  ;;  %556 = vmatprep.subr.bf16.mxu0 %v641_v14  ;;  %v592_v17 = vpop.eup %591 }
  0xac   :  { %593 = vtanh.f32 %v173_v5 }
  0xad   :  { %v159_v8 = vpop.permute.xlu1 %158  ;;  %v217_v52 = vpop.permute.xlu0 %216 }
  0xae   :  { %v175_v11 = vadd.f32 %v159_v8, %v126_v9 }
  0xb0   :  { %595 = vtanh.f32 %v175_v11 }
  0xb1   :  { %v164_v13 = vpop.permute.xlu1 %163  ;;  %v227_v63 = vpop.permute.xlu0 %226 }
  0xb2   :  { %v176_v15 = vadd.f32 %v164_v13, %v127_v12  ;;  %v367_v13 = vld [vmem:[%s837_s5] sm:$0x1] }
  0xb4   :  { %597 = vtanh.f32 %v176_v15 }
  0xb5   :  { %v372_v16 = vpop.permute.xlu0 %371 }
  0xb6   :  { %v594_v18 = vpop.eup %593  ;;  %v109_v19 = vpop.permute.xlu1 %108 }
  0xb7   :  { %v121_v21 = vmul.f32 %v114_v39, %v109_v19  ;;  %v557_v23 = vpack.c.bf16 %v592_v17, %v594_v18  ;;  %v191_v39 = vld [vmem:[%s835_s3 + $0x30] sm:$0x3] }
  0xb9   :  { %v128_v24 = vadd.f32 %v121_v21, %v82_v20  ;;  %558 = vmatpush3.bf16.msra.mxu0 %v557_v23 }
  0xba   :  { %559 = vmatprep.subr.bf16.mxu0 %v641_v14  ;;  %v596_v27 = vpop.eup %595 }
  0xbb   :  { %v177_v26 = vadd.f32 %v169_v25, %v128_v24  ;;  %v202_v40 = vpop.permute.xlu1 %201 }
  0xbd   :  { %599 = vtanh.f32 %v177_v26 }
  0xbe   :  { %v598_v28 = vpop.eup %597 }
  0xbf   :  { %v560_v29 = vpack.c.bf16 %v598_v28, %v596_v27  ;;  %v212_v49 = vpop.permute.xlu1 %211 }
  0xc1   :  { %561 = vmatpush3.bf16.msra.mxu0 %v560_v29 }
  0xc2   :  { %513 = vmatprep.subr.mxu0 %v643_v22 }
  0xc3   :  { %v222_v59 = vpop.permute.xlu1 %221 }
  0xc7   :  { %v600_v32 = vpop.eup %599  ;;  %v232_v4 = vpop.permute.xlu1 %231 }
  0xc8   :  { %514 = vmatpush3.msk.msra.mxu0 %vm256_vm1, %v600_v32 }
  0xc9   :  { %516 = vmatmul.mubr.msk.f32.vlgmr.msra.gmra.mrb[0].mxu0 %vm234_vm2, %v185_v31 }
  0xca   :  { %518 = vmatprep.mubr.msk.f32.mxu0 %vm642_vm0, %v643_v22 }
  0xcd   :  { %519 = vmatmul.mubr.msk.f32.gmra.mrb[2].mxu0 %vm234_vm2, %v186_v34 }
  0xce   :  { %521 = vmatprep.mubr.msk.f32.mxu0 %vm642_vm0, %v643_v22 }
  0xd1   :  { %522 = vmatmul.mubr.msk.f32.gmra.mrb[4].mxu0 %vm234_vm2, %v187_v35 }
  0xd2   :  { %524 = vmatprep.mubr.msk.f32.mxu0 %vm642_vm0, %v643_v22 }
  0xd5   :  { %525 = vmatmul.mubr.msk.f32.gmra.mrb[6].mxu0 %vm234_vm2, %v188_v36 }
  0xd6   :  { %527 = vmatprep.mubr.msk.f32.mxu0 %vm642_vm0, %v643_v22 }
  0xd9   :  { %528 = vmatmul.mubr.msk.f32.gmra.mrb[8].mxu0 %vm234_vm2, %v189_v37 }
  0xda   :  { %530 = vmatprep.mubr.msk.f32.mxu0 %vm642_vm0, %v643_v22 }
  0xdd   :  { %531 = vmatmul.mubr.msk.f32.gmra.mrb[10].mxu0 %vm234_vm2, %v190_v38 }
  0xde   :  { %533 = vmatprep.mubr.msk.f32.mxu0 %vm642_vm0, %v643_v22 }
  0xe1   :  { %534 = vmatmul.mubr.msk.f32.gmra.mrb[12].mxu0 %vm234_vm2, %v191_v39 }
 0x19c   :  { %v326_v41 = vpop.f32.mrb[0].mxu0 }
 0x19d   :  { %v517_v42 = vpop.f32.mrb[1].mxu0  ;;  %v327_v43 = vadd.f32 %v326_v41, %v202_v40 }
 0x19f   :  { %601 = vtanh.f32 %v327_v43 }
 0x1a0   :  { %v331_v45 = vpop.f32.mrb[2].mxu0 }
 0x1a1   :  { %v332_v46 = vadd.f32 %v331_v45, %v207_v44  ;;  %v520_v47 = vpop.f32.mrb[3].mxu0 }
 0x1a3   :  { %603 = vtanh.f32 %v332_v46 }
 0x1a4   :  { %v336_v48 = vpop.f32.mrb[4].mxu0 }
 0x1a5   :  { %v523_v50 = vpop.f32.mrb[5].mxu0  ;;  %v337_v51 = vadd.f32 %v336_v48, %v212_v49 }
 0x1a7   :  { %605 = vtanh.f32 %v337_v51 }
 0x1a8   :  { %v341_v53 = vpop.f32.mrb[6].mxu0 }
 0x1a9   :  { %v342_v54 = vadd.f32 %v341_v53, %v217_v52  ;;  %v526_v55 = vpop.f32.mrb[7].mxu0  ;;  %v602_v56 = vpop.eup %601 }
 0x1ab   :  { %607 = vtanh.f32 %v342_v54 }
 0x1ac   :  { %v346_v57 = vpop.f32.mrb[8].mxu0 }
 0x1ad   :  { %v604_v58 = vpop.eup %603  ;;  %v529_v60 = vpop.f32.mrb[9].mxu0  ;;  %v347_v61 = vadd.f32 %v346_v57, %v222_v59 }
 0x1ae   :  { %v563_v62 = vpack.c.bf16 %v604_v58, %v602_v56 }
 0x1af   :  { %609 = vtanh.f32 %v347_v61 }
 0x1b0   :  { %v351_v0 = vpop.f32.mrb[10].mxu0  ;;  %564 = vmatpush3.bf16.msra.mxu1 %v563_v62 }
 0x1b1   :  { %v352_v1 = vadd.f32 %v351_v0, %v227_v63  ;;  %v532_v2 = vpop.f32.mrb[11].mxu0  ;;  %565 = vmatprep.subr.bf16.mxu1 %v641_v14  ;;  %v606_v3 = vpop.eup %605 }
 0x1b3   :  { %611 = vtanh.f32 %v352_v1 }
 0x1b4   :  { %v356_v5 = vpop.f32.mrb[12].mxu0 }
 0x1b5   :  { %v608_v6 = vpop.eup %607  ;;  %v357_v7 = vadd.f32 %v356_v5, %v232_v4  ;;  %v535_v8 = vpop.f32.mrb[13].mxu0 }
 0x1b6   :  { %v566_v9 = vpack.c.bf16 %v608_v6, %v606_v3 }
 0x1b7   :  { %613 = vtanh.f32 %v357_v7 }
 0x1b8   :  { %567 = vmatpush3.bf16.msra.mxu1 %v566_v9 }
 0x1b9   :  { %568 = vmatprep.subr.bf16.mxu1 %v641_v14  ;;  %v610_v10 = vpop.eup %609  ;;  %v377_v14 = vrot.slane %v372_v16, %v74_v33 }
 0x1bd   :  { %v612_v11 = vpop.eup %611 }
 0x1be   :  { %v569_v12 = vpack.c.bf16 %v612_v11, %v610_v10 }
 0x1c0   :  { %570 = vmatpush3.bf16.msra.mxu1 %v569_v12 }
 0x1c1   :  { %548 = vmatprep.subr.mxu1 %v643_v22  ;;  %v614_v15 = vpop.eup %613 }
 0x1c4   :  { %549 = vmatpush3.msk.msra.mxu1 %vm256_vm1, %v614_v15 }
 0x1c5   :  { %551 = vmatmul.mubr.msk.f32.vlgmr.msra.gmra.mrb[0].mxu1 %vm234_vm2, %v367_v13 }
 0x298   :  { %v450_v17 = vpop.f32.mrb[0].mxu1 }
 0x299   :  { %v451_v18 = vadd.f32 %v450_v17, %v377_v14  ;;  %v552_v19 = vpop.f32.mrb[1].mxu1 }
 0x29b   :  { %454 = vst [vmem:[#allocation3] sm:$0x1] %v451_v18 }
 0x29c   :  { %626 = shalt.err (!%p623_p4)
}
 0x29d   :  { %s627_s2 = scalar_lea.hbm %s839_s7, 16 }
 0x29e   :  { %p628_p5 = scmp.ne.s32.totalorder %s839_s7, %s627_s2  ;;  %p631_p6 = scmp.lt.u32.totalorder %s627_s2, %s839_s7 }
 0x2a0   :  { %p633_p7 = pnand %p631_p6, %p628_p5 }
 0x2a2   :  { %636 = shalt.err (!%p633_p7)
}
 0x2a3   :  { %464 = dma.vmem_to_hbm [thread:$0]  %s462_s6, 16, %s839_s7, [#allocation4]  }
 0x2a4   :  { %637 = dma.done.wait [#allocation4], 16  }
 0x2a5   :  { %638 = vsyncadd [#allocation4], 4294967280 }
 0x2a6   :  { %468 = vsyncpa [#allocation4], 1 }

</bundles_post_ra>
